<compile_context>
chip_gen: v7x
topology: tpu7x:2x2x1
jax: 0.10.0
libtpu: 0.0.40
codegen_flags: <defaults>
</compile_context>

<pallas_src>
import jax
import jax.numpy as jnp
from jax import lax
from jax.experimental import pallas as pl
from jax.experimental.pallas import tpu as pltpu


def _round_up(x, m):
    return (x + m - 1) // m * m


def _pad2(x, rows, cols):
    return jnp.pad(x, ((0, rows - x.shape[0]), (0, cols - x.shape[1])))


def _tpu_vmem_capacity_bytes():
    try:
        info = pltpu.get_tpu_info()
        return int(getattr(info, "vmem_capacity_bytes", 128 * 1024 * 1024))
    except Exception:
        return 128 * 1024 * 1024


# ----------------------------- stage 1: per-relation precompute ----------------------------

def _gat_precompute_kernel(src_idx_ref, xs_ref, xd_ref, wsrc_ref, al_ref, wdar_ref,
                           fs_ref, el_ref, er_ref):
    """Grid = (relations,).  Per-relation projections computed exactly once.

    xs_ref  : (Ns_pad, Fin_pad)   bf16  src-ntype features (picked via src_idx scalar prefetch)
    xd_ref  : (Nd_pad, Fin_pad)   bf16  dst features (same block every step -> single DMA)
    wsrc_ref: (Fin_pad, Fout_pad) bf16
    al_ref  : (1, Fout_pad)       f32   attn_l
    wdar_ref: (Fin_pad, 1)        bf16  W_dst @ attn_r^T  (folded on host)
    fs_ref  : (Ns_pad, Fout_pad)  bf16  out
    el_ref  : (1, Ns_pad)         f32   out
    er_ref  : (Nd_pad, 1)         f32   out
    """
    del src_idx_ref  # consumed by the index maps only
    # fc_src: bf16 operands, f32 accumulation on the MXU.
    fs = jnp.dot(xs_ref[...], wsrc_ref[...], preferred_element_type=jnp.float32)
    fs_ref[...] = fs.astype(jnp.bfloat16)
    # el[j] = <fs[j], attn_l> as a rank-1 contraction -> (1, Ns).
    el_ref[...] = lax.dot_general(al_ref[...], fs, (((1,), (1,)), ((), ())),
                                  preferred_element_type=jnp.float32)
    # er[i] = <xd[i] @ W_dst, attn_r> = xd[i] . (W_dst @ attn_r^T); once per relation.
    er_ref[...] = jnp.dot(xd_ref[...], wdar_ref[...], preferred_element_type=jnp.float32)


def gat_precompute(src_idx, xs_all, xd, wsrc_stack, al_stack, wdar_stack, *, vmem_limit):
    n_rel = wsrc_stack.shape[0]
    _, ns_p, fin_p = xs_all.shape
    nd_p = xd.shape[0]
    fout_p = wsrc_stack.shape[2]

    return pl.pallas_call(
        _gat_precompute_kernel,
        out_shape=(
            jax.ShapeDtypeStruct((n_rel, ns_p, fout_p), jnp.bfloat16),   # fs
            jax.ShapeDtypeStruct((n_rel, 1, ns_p), jnp.float32),         # el
            jax.ShapeDtypeStruct((n_rel, nd_p, 1), jnp.float32),         # er
        ),
        grid_spec=pltpu.PrefetchScalarGridSpec(
            num_scalar_prefetch=1,
            grid=(n_rel,),
            in_specs=[
                pl.BlockSpec((None, ns_p, fin_p), lambda r, si: (si[r], 0, 0)),   # xs (dedup)
                pl.BlockSpec((nd_p, fin_p), lambda r, si: (0, 0)),                # xd (once)
                pl.BlockSpec((None, fin_p, fout_p), lambda r, si: (r, 0, 0)),     # W_src
                pl.BlockSpec((None, 1, fout_p), lambda r, si: (r, 0, 0)),         # attn_l
                pl.BlockSpec((None, fin_p, 1), lambda r, si: (r, 0, 0)),          # W_dst@attn_r
            ],
            out_specs=[
                pl.BlockSpec((None, ns_p, fout_p), lambda r, si: (r, 0, 0)),
                pl.BlockSpec((None, 1, ns_p), lambda r, si: (r, 0, 0)),
                pl.BlockSpec((None, nd_p, 1), lambda r, si: (r, 0, 0)),
            ],
        ),
        compiler_params=pltpu.CompilerParams(
            dimension_semantics=("arbitrary",),
            vmem_limit_bytes=vmem_limit,
        ),
    )(src_idx, xs_all, xd, wsrc_stack, al_stack, wdar_stack)


# ----------------------------- stage 2: softmax + message aggregation ----------------------

def _gat_softmax_agg_kernel(fs_ref, el_ref, er_ref, adj_ref, bias_ref, out_ref):
    """Grid = (dst-row tiles [parallel], relations hitting this dst ntype [arbitrary]).

    fs_ref  : (Ns_pad, Fout_pad) bf16   precomputed xs @ W_src for this relation
    el_ref  : (1, Ns_pad)        f32    precomputed per-src attention logits
    er_ref  : (TM, 1)            f32    precomputed per-dst attention logits (this row tile)
    adj_ref : (TM, Ns_pad)       int8   dense edge mask (dst, src)
    bias_ref: (1, Fout_pad)      f32
    out_ref : (TM, Fout_pad)     f32    resident accumulator across the relation axis
    """
    rel = pl.program_id(1)

    @pl.when(rel == 0)
    def _():
        # HeteroGraphConv aggregate='sum' seeded with the per-ntype bias.  activation=None,
        # dropout(p=0, eval) and .mean(1) over the single head are identities.
        out_ref[...] = jnp.zeros_like(out_ref) + bias_ref[...]

    # score e[i, j] = leaky_relu(er[i] + el[j]) on real edges, -inf elsewhere.
    e = er_ref[...] + el_ref[...]                                    # (TM, Ns) f32
    e = jnp.where(e >= 0.0, e, jnp.float32(0.2) * e)                 # LeakyReLU(0.2)
    e = jnp.where(adj_ref[...] > 0, e, jnp.float32(-1e30))           # int8 mask, no f32 convert

    # edge_softmax over incoming edges of each dst row (attn_drop = 0), normalization deferred:
    # scale the (TM, Fout) message by 1/denom instead of dividing the (TM, Ns) slab.
    m = jnp.max(e, axis=-1, keepdims=True)
    p = jnp.exp(e - m)                                               # masked cols underflow to 0
    denom = jnp.sum(p, axis=-1, keepdims=True)
    inv = pl.reciprocal(jnp.maximum(denom, jnp.float32(1e-20)), approx=True)   # (TM, 1) on EUP

    # message passing: out[i] += (1/denom[i]) * sum_j p[i, j] * fs[j]  (bf16 MXU, f32 acc)
    out_ref[...] += inv * jnp.dot(p.astype(jnp.bfloat16), fs_ref[...],
                                  preferred_element_type=jnp.float32)


def gat_softmax_aggregate(fs_stack, el_stack, er_stack, adj_stack, bias, *, tm, vmem_limit):
    n_rel, ns_p, fout_p = fs_stack.shape
    nd_p = adj_stack.shape[1]
    grid = (nd_p // tm, n_rel)

    return pl.pallas_call(
        _gat_softmax_agg_kernel,
        out_shape=jax.ShapeDtypeStruct((nd_p, fout_p), jnp.float32),
        grid=grid,
        in_specs=[
            pl.BlockSpec((None, ns_p, fout_p), lambda i, r: (r, 0, 0)),   # fs  (per relation)
            pl.BlockSpec((None, 1, ns_p), lambda i, r: (r, 0, 0)),        # el  (per relation)
            pl.BlockSpec((None, tm, 1), lambda i, r: (r, i, 0)),          # er  row tile
            pl.BlockSpec((None, tm, ns_p), lambda i, r: (r, i, 0)),       # adj int8 tile
            pl.BlockSpec((1, fout_p), lambda i, r: (0, 0)),               # bias (fetched once)
        ],
        out_specs=pl.BlockSpec((tm, fout_p), lambda i, r: (i, 0)),
        compiler_params=pltpu.CompilerParams(
            dimension_semantics=("parallel", "arbitrary"),
            vmem_limit_bytes=vmem_limit,
        ),
    )(fs_stack, el_stack, er_stack, adj_stack, bias)


# ----------------------------- RelGraphConvLayer port --------------------------------------

class RelGraphConvLayerPallas:
    """JAX/Pallas port of RelGraphConvLayer with GAT-based HeteroGraphConv (num_heads=1,
    weight=True, bias=True, activation=None, self_loop=False, dropout=0.0, eval mode)."""

    def __init__(self, in_feat, out_feat, canonical_rels, ntype_names, key):
        self.in_feat = in_feat
        self.out_feat = out_feat
        self.canonical_rels = canonical_rels           # list of (src_ntype, rel_name, dst_ntype)
        self.ntype_names = ntype_names

        self.fin_p = max(128, _round_up(in_feat, 128))
        self.fout_p = max(128, _round_up(out_feat, 128))

        # Generation-aware VMEM budget / dst-row tile (v7x has 64 MiB/TC, v5e/v6e 128 MiB).
        cap = _tpu_vmem_capacity_bytes()
        if cap >= 96 * 1024 * 1024:
            self.vmem_limit, self.tm_max = 96 * 1024 * 1024, 256
        else:
            self.vmem_limit, self.tm_max = max(32 * 1024 * 1024, cap // 2), 128

        n_rel = len(canonical_rels)
        keys = jax.random.split(key, 4 * n_rel + len(ntype_names))
        ki = iter(range(len(keys)))

        def glorot(k, shape):
            fan_in, fan_out = shape[-2], shape[-1]
            scale = jnp.sqrt(2.0 / (fan_in + fan_out)).astype(jnp.float32)
            return scale * jax.random.normal(k, shape, dtype=jnp.float32)

        # Per-relation GATConv params: fc_src / fc_dst weights (no bias) and attn_l / attn_r.
        self.rel_params = {}
        for (_, rel, _) in canonical_rels:
            wsrc = glorot(keys[next(ki)], (in_feat, out_feat))
            wdst = glorot(keys[next(ki)], (in_feat, out_feat))
            al = glorot(keys[next(ki)], (1, out_feat))
            ar = glorot(keys[next(ki)], (1, out_feat))
            self.rel_params[rel] = (wsrc, wdst, al, ar)

        # Per-ntype bias (nn.init.normal_ on a (1, out_feat) parameter).
        self.bias = {nt: jax.random.normal(keys[next(ki)], (1, out_feat), dtype=jnp.float32)
                     for nt in ntype_names}

        # NOTE: the reference module also builds self.weight (n_rel, in, out) and passes it to
        # each GATConv via mod_kwargs {'weight': w}; dgl GATConv never consumes that kwarg, so
        # it has no effect on the forward values and is omitted here (same for WeightBasis).
        # TODO(synk): self_loop=False (module default) -> loop_weight matmul path not exercised.

        # Group relations by dst ntype; hoist parameter padding / casting / stacking and the
        # W_dst @ attn_r fold out of the forward pass.
        self.groups = {}
        for (src_t, rel, dst_t) in canonical_rels:
            self.groups.setdefault(dst_t, []).append((src_t, rel))

        self._group_params = {}
        for dst_t, rels in self.groups.items():
            src_types = []
            for (src_t, _) in rels:
                if src_t not in src_types:
                    src_types.append(src_t)
            src_idx = jnp.asarray([src_types.index(s) for (s, _) in rels], dtype=jnp.int32)

            wsrc_l, al_l, wdar_l = [], [], []
            for (_, rel) in rels:
                wsrc, wdst, al, ar = self.rel_params[rel]
                wsrc_l.append(_pad2(wsrc, self.fin_p, self.fout_p).astype(jnp.bfloat16))
                al_l.append(_pad2(al, 1, self.fout_p))
                wdar_l.append(_pad2(wdst @ ar.T, self.fin_p, 1).astype(jnp.bfloat16))

            self._group_params[dst_t] = dict(
                src_types=src_types,
                src_idx=src_idx,
                rel_names=[rel for (_, rel) in rels],
                wsrc=jnp.stack(wsrc_l),
                al=jnp.stack(al_l),
                wdar=jnp.stack(wdar_l),
                bias=_pad2(self.bias[dst_t], 1, self.fout_p),
            )

    def __call__(self, adjs, inputs):
        out = {}
        for dst_t, rels in self.groups.items():
            gp = self._group_params[dst_t]
            xd = inputs[dst_t]
            nd = xd.shape[0]
            # dst-row tile: multiple of 32 so the int8 adj tile keeps native sublane packing.
            tm = min(self.tm_max, _round_up(nd, 32))
            nd_p = _round_up(nd, tm)
            ns_p = max(128, _round_up(max(inputs[s].shape[0] for s in gp["src_types"]), 128))
            # TODO(synk): for very large src ntypes add an inner Ns grid axis with online
            # (flash-style) softmax; here each relation's (TM, Ns_pad) slab fits VMEM.

            # De-duplicated src features (one padded copy per src ntype, indexed by src_idx).
            xs_all = jnp.stack([_pad2(inputs[s], ns_p, self.fin_p).astype(jnp.bfloat16)
                                for s in gp["src_types"]])
            xd_p = _pad2(xd, nd_p, self.fin_p).astype(jnp.bfloat16)
            adj_stack = jnp.stack([_pad2(adjs[rel], nd_p, ns_p).astype(jnp.int8)
                                   for rel in gp["rel_names"]])

            fs, el, er = gat_precompute(gp["src_idx"], xs_all, xd_p, gp["wsrc"], gp["al"],
                                        gp["wdar"], vmem_limit=self.vmem_limit)
            h = gat_softmax_aggregate(fs, el, er, adj_stack, gp["bias"],
                                      tm=tm, vmem_limit=self.vmem_limit)
            # Padded dst rows (nd..nd_p) hold garbage (uniform softmax over padded columns);
            # they are sliced off here and never read again.
            out[dst_t] = h[:nd, :self.out_feat]
        return out


# ----------------------------- pure-JAX reference ------------------------------------------

def _layer_ref(layer, adjs, inputs):
    def rel_ref(xs, xd, adj, wsrc, wdst, al, ar):
        fs = xs @ wsrc
        fd = xd @ wdst
        el = jnp.sum(fs * al, axis=-1)
        er = jnp.sum(fd * ar, axis=-1)
        e = er[:, None] + el[None, :]
        e = jnp.where(e >= 0.0, e, 0.2 * e)
        e = jnp.where(adj > 0, e, -jnp.inf)
        a = jax.nn.softmax(e, axis=-1)
        a = jnp.where(adj > 0, a, 0.0)
        return a @ fs

    per_dst = {}
    for (src_t, rel, dst_t) in layer.canonical_rels:
        per_dst.setdefault(dst_t, []).append(
            rel_ref(inputs[src_t], inputs[dst_t], adjs[rel], *layer.rel_params[rel]))
    return {d: sum(hs) + layer.bias[d] for d, hs in per_dst.items()}


# ----------------------------- demo -------------------------------------------------------

if __name__ == "__main__":
    key = jax.random.PRNGKey(0)
    in_feat, out_feat = 16, 32
    ntype_counts = {"ntA": 10, "ntB": 12}
    # canonical relations: (src_ntype, relation_name, dst_ntype)
    canonical = [("ntA", "r0", "ntB"), ("ntB", "r1", "ntA"), ("ntA", "r2", "ntA")]

    k_layer, k_feat, k_adj = jax.random.split(key, 3)

    # node features per ntype
    fkeys = jax.random.split(k_feat, len(ntype_counts))
    inputs = {nt: jax.random.normal(fk, (n, in_feat), dtype=jnp.float32)
              for fk, (nt, n) in zip(fkeys, ntype_counts.items())}

    # dense adjacency mask per relation; force in-degree >= 1 (GATConv forbids zero in-degree)
    adjs = {}
    akeys = jax.random.split(k_adj, len(canonical))
    for ak, (src_t, rel, dst_t) in zip(akeys, canonical):
        nd, ns = ntype_counts[dst_t], ntype_counts[src_t]
        adj = jax.random.bernoulli(ak, 0.4, (nd, ns)).astype(jnp.float32)
        adj = adj.at[:, 0].set(1.0)
        adjs[rel] = adj

    layer = RelGraphConvLayerPallas(in_feat, out_feat, canonical,
                                    list(ntype_counts.keys()), k_layer)

    out = layer(adjs, inputs)
    out = {nt: jax.block_until_ready(h) for nt, h in out.items()}

    ref = _layer_ref(layer, adjs, inputs)
    for nt, h in out.items():
        assert h.shape == (ntype_counts[nt], out_feat), (nt, h.shape)
        # bf16 matmul operands (f32 accumulation) + approx reciprocal -> loose tolerance
        assert jnp.allclose(h, ref[nt], rtol=2e-2, atol=2e-2), f"mismatch for ntype {nt}"

    print("KERNEL_OK")
</pallas_src>

<mosaic_0001>
module attributes {stable_mosaic.version = 11 : i64} {
  func.func @_gat_precompute_kernel(%arg0: i32, %arg1: memref<1xi32, #tpu.memory_space<smem>>, %arg2: memref<1x128x128xbf16, #tpu.memory_space<vmem>>, %arg3: memref<32x128xbf16, #tpu.memory_space<vmem>>, %arg4: memref<1x128x128xbf16, #tpu.memory_space<vmem>>, %arg5: memref<1x1x128xf32, #tpu.memory_space<vmem>>, %arg6: memref<1x128x1xbf16, #tpu.memory_space<vmem>>, %arg7: memref<1x128x128xbf16, #tpu.memory_space<vmem>>, %arg8: memref<1x1x128xf32, #tpu.memory_space<vmem>>, %arg9: memref<1x32x1xf32, #tpu.memory_space<vmem>>) attributes {dimension_semantics = [#tpu.dimension_semantics<arbitrary>], iteration_bounds = array<i64: 1>, scalar_prefetch = 1 : i64, scratch_operands = 0 : i64, tpu.core_type = #tpu.core_type<tc>, window_params = [{transform_indices = @transform_0, window_bounds = array<i64: 1, 128, 128>}, {pipeline_mode = #tpu.pipeline_mode<synchronous>, transform_indices = @transform_1, window_bounds = array<i64: 32, 128>}, {transform_indices = @transform_2, window_bounds = array<i64: 1, 128, 128>}, {transform_indices = @transform_3, window_bounds = array<i64: 1, 1, 128>}, {transform_indices = @transform_4, window_bounds = array<i64: 1, 128, 1>}, {transform_indices = @transform_5, window_bounds = array<i64: 1, 128, 128>}, {transform_indices = @transform_6, window_bounds = array<i64: 1, 1, 128>}, {transform_indices = @transform_7, window_bounds = array<i64: 1, 32, 1>}]} {
    %c0 = arith.constant 0 : index
    %c0_0 = arith.constant 0 : index
    %c0_1 = arith.constant 0 : index
    %0 = vector.load %arg2[%c0, %c0_0, %c0_1] : memref<1x128x128xbf16, #tpu.memory_space<vmem>>, vector<1x128x128xbf16>
    %1 = vector.shape_cast %0 : vector<1x128x128xbf16> to vector<128x128xbf16>
    %c0_2 = arith.constant 0 : index
    %c0_3 = arith.constant 0 : index
    %c0_4 = arith.constant 0 : index
    %2 = vector.load %arg4[%c0_2, %c0_3, %c0_4] : memref<1x128x128xbf16, #tpu.memory_space<vmem>>, vector<1x128x128xbf16>
    %3 = vector.shape_cast %2 : vector<1x128x128xbf16> to vector<128x128xbf16>
    %cst = arith.constant dense<0.000000e+00> : vector<128x128xf32>
    %4 = tpu.matmul %1, %3, %cst {dimension_numbers = #tpu.dot_dimension_numbers<[1], [0], [0], [1], [0, 0, 1, 1], [], []>} : vector<128x128xbf16>, vector<128x128xbf16>, vector<128x128xf32> -> vector<128x128xf32>
    %5 = arith.truncf %4 : vector<128x128xf32> to vector<128x128xbf16>
    %c0_5 = arith.constant 0 : index
    %c0_6 = arith.constant 0 : index
    %c0_7 = arith.constant 0 : index
    %6 = vector.load %arg7[%c0_5, %c0_6, %c0_7] : memref<1x128x128xbf16, #tpu.memory_space<vmem>>, vector<1x128x128xbf16>
    %7 = vector.shape_cast %6 : vector<1x128x128xbf16> to vector<128x128xbf16>
    %8 = vector.shape_cast %5 : vector<128x128xbf16> to vector<1x128x128xbf16>
    tpu.vector_store %arg7[%c0_5, %c0_6, %c0_7], %8 {strides = array<i32>} : memref<1x128x128xbf16, #tpu.memory_space<vmem>>, vector<1x128x128xbf16>,
    %c0_8 = arith.constant 0 : index
    %c0_9 = arith.constant 0 : index
    %c0_10 = arith.constant 0 : index
    %9 = vector.load %arg5[%c0_8, %c0_9, %c0_10] : memref<1x1x128xf32, #tpu.memory_space<vmem>>, vector<1x1x128xf32>
    %10 = vector.shape_cast %9 : vector<1x1x128xf32> to vector<1x128xf32>
    %cst_11 = arith.constant dense<0.000000e+00> : vector<1x128xf32>
    %11 = tpu.matmul %10, %4, %cst_11 {dimension_numbers = #tpu.dot_dimension_numbers<[1], [1], [0], [0], [0, 0, 1, 0], [], []>} : vector<1x128xf32>, vector<128x128xf32>, vector<1x128xf32> -> vector<1x128xf32>
    %c0_12 = arith.constant 0 : index
    %c0_13 = arith.constant 0 : index
    %c0_14 = arith.constant 0 : index
    %12 = vector.load %arg8[%c0_12, %c0_13, %c0_14] : memref<1x1x128xf32, #tpu.memory_space<vmem>>, vector<1x1x128xf32>
    %13 = vector.shape_cast %12 : vector<1x1x128xf32> to vector<1x128xf32>
    %14 = vector.shape_cast %11 : vector<1x128xf32> to vector<1x1x128xf32>
    tpu.vector_store %arg8[%c0_12, %c0_13, %c0_14], %14 {strides = array<i32>} : memref<1x1x128xf32, #tpu.memory_space<vmem>>, vector<1x1x128xf32>,
    %c0_15 = arith.constant 0 : index
    %c0_16 = arith.constant 0 : index
    %15 = vector.load %arg3[%c0_15, %c0_16] : memref<32x128xbf16, #tpu.memory_space<vmem>>, vector<32x128xbf16>
    %c0_17 = arith.constant 0 : index
    %c0_18 = arith.constant 0 : index
    %c0_19 = arith.constant 0 : index
    %16 = vector.load %arg6[%c0_17, %c0_18, %c0_19] : memref<1x128x1xbf16, #tpu.memory_space<vmem>>, vector<1x128x1xbf16>
    %17 = vector.shape_cast %16 : vector<1x128x1xbf16> to vector<128x1xbf16>
    %cst_20 = arith.constant dense<0.000000e+00> : vector<32x1xf32>
    %18 = tpu.matmul %15, %17, %cst_20 {dimension_numbers = #tpu.dot_dimension_numbers<[1], [0], [0], [1], [0, 0, 1, 1], [], []>} : vector<32x128xbf16>, vector<128x1xbf16>, vector<32x1xf32> -> vector<32x1xf32>
    %c0_21 = arith.constant 0 : index
    %c0_22 = arith.constant 0 : index
    %c0_23 = arith.constant 0 : index
    %19 = vector.load %arg9[%c0_21, %c0_22, %c0_23] : memref<1x32x1xf32, #tpu.memory_space<vmem>>, vector<1x32x1xf32>
    %20 = vector.shape_cast %19 : vector<1x32x1xf32> to vector<32x1xf32>
    %21 = vector.shape_cast %18 : vector<32x1xf32> to vector<1x32x1xf32>
    tpu.vector_store %arg9[%c0_21, %c0_22, %c0_23], %21 {strides = array<i32>} : memref<1x32x1xf32, #tpu.memory_space<vmem>>, vector<1x32x1xf32>,
    return
  }
  func.func @transform_0(%arg0: i32, %arg1: memref<1xi32, #tpu.memory_space<smem>>) -> (i32, i32, i32) {
    %0 = arith.index_cast %arg0 : i32 to index
    %1 = memref.load %arg1[%0] : memref<1xi32, #tpu.memory_space<smem>>
    %c0_i32 = arith.constant 0 : i32
    %c0_i32_0 = arith.constant 0 : i32
    %c0_i32_1 = arith.constant 0 : i32
    return %1, %c0_i32, %c0_i32_0 : i32, i32, i32
  }
  func.func @transform_1(%arg0: i32, %arg1: memref<1xi32, #tpu.memory_space<smem>>) -> (i32, i32) {
    %c0_i32 = arith.constant 0 : i32
    %c0_i32_0 = arith.constant 0 : i32
    %c0_i32_1 = arith.constant 0 : i32
    return %c0_i32, %c0_i32_0 : i32, i32
  }
  func.func @transform_2(%arg0: i32, %arg1: memref<1xi32, #tpu.memory_space<smem>>) -> (i32, i32, i32) {
    %c0_i32 = arith.constant 0 : i32
    %c0_i32_0 = arith.constant 0 : i32
    %c0_i32_1 = arith.constant 0 : i32
    return %arg0, %c0_i32, %c0_i32_0 : i32, i32, i32
  }
  func.func @transform_3(%arg0: i32, %arg1: memref<1xi32, #tpu.memory_space<smem>>) -> (i32, i32, i32) {
    %c0_i32 = arith.constant 0 : i32
    %c0_i32_0 = arith.constant 0 : i32
    %c0_i32_1 = arith.constant 0 : i32
    return %arg0, %c0_i32, %c0_i32_0 : i32, i32, i32
  }
  func.func @transform_4(%arg0: i32, %arg1: memref<1xi32, #tpu.memory_space<smem>>) -> (i32, i32, i32) {
    %c0_i32 = arith.constant 0 : i32
    %c0_i32_0 = arith.constant 0 : i32
    %c0_i32_1 = arith.constant 0 : i32
    return %arg0, %c0_i32, %c0_i32_0 : i32, i32, i32
  }
  func.func @transform_5(%arg0: i32, %arg1: memref<1xi32, #tpu.memory_space<smem>>) -> (i32, i32, i32) {
    %c0_i32 = arith.constant 0 : i32
    %c0_i32_0 = arith.constant 0 : i32
    %c0_i32_1 = arith.constant 0 : i32
    return %arg0, %c0_i32, %c0_i32_0 : i32, i32, i32
  }
  func.func @transform_6(%arg0: i32, %arg1: memref<1xi32, #tpu.memory_space<smem>>) -> (i32, i32, i32) {
    %c0_i32 = arith.constant 0 : i32
    %c0_i32_0 = arith.constant 0 : i32
    %c0_i32_1 = arith.constant 0 : i32
    return %arg0, %c0_i32, %c0_i32_0 : i32, i32, i32
  }
  func.func @transform_7(%arg0: i32, %arg1: memref<1xi32, #tpu.memory_space<smem>>) -> (i32, i32, i32) {
    %c0_i32 = arith.constant 0 : i32
    %c0_i32_0 = arith.constant 0 : i32
    %c0_i32_1 = arith.constant 0 : i32
    return %arg0, %c0_i32, %c0_i32_0 : i32, i32, i32
  }
}

</mosaic_0001>

<bundles_post_ra>
// kernel: tpu_custom_call.1
= control target key start
LH: loop header
LB: loop body
LE: loop exit
PB: predicated region body
PF: predicated region fallthrough
CT: control target
= control target key end

     0   :  { %15 = vsyncpa [#allocation5], 0  ;;  %s1345_s0 = inlined_call_operand.<no memory space> [shape: s32[1], index: 0, kind: input, shape index: {}]   ;;  %s1346_s1 = inlined_call_operand.hbm [shape: bf16[1,128,128], index: 1, kind: input, shape index: {}]   ;;  %s1347_s2 = inlined_call_operand.hbm [shape: bf16[32,128], index: 2, kind: input, shape index: {}]   ;;  %s1348_s3 = inlined_call_operand.hbm [shape: bf16[1,128,128], index: 3, kind: input, shape index: {}]   ;;  %s1349_s4 = inlined_call_operand.hbm [shape: f32[1,1,128], index: 4, kind: input, shape index: {}]   ;;  %s1350_s5 = inlined_call_operand.hbm [shape: bf16[1,128,1], index: 5, kind: input, shape index: {}]   ;;  %s1351_s6 = inlined_call_operand.hbm [shape: bf16[1,128,128], index: 6, kind: output, shape index: {0}]   ;;  %s1352_s7 = inlined_call_operand.hbm [shape: f32[1,1,128], index: 7, kind: output, shape index: {1}]   ;;  %s1353_s8 = inlined_call_operand.hbm [shape: f32[1,32,1], index: 8, kind: output, shape index: {2}]  }
   0x1   :  { %16 = vsyncpa [#allocation8], 0 }
   0x2   :  { %17 = vsyncpa [#allocation11], 0 }
   0x3   :  { %18 = vsyncpa [#allocation6], 0 }
   0x4   :  { %19 = vsyncpa [#allocation15], 0  ;;  %s1151_s27 = smov [#allocation7]   ;;  %s1152_s29 = smov [#allocation10]  }
   0x5   :  { %s41_s28 = sshll.u32 %s1151_s27, 4  ;;  %s66_s30 = sshll.u32 %s1152_s29, 4  ;;  %s42_s28 = int_to_ptr.vmem [resolvable:$true] %s41_s28  ;;  %s1211_s30 = int_to_ptr.vmem [resolvable:$true] %s66_s30 }
   0x6   :  { %s963_s11 = scalar_lea.hbm %s1347_s2, 256 }
   0x7   :  { %p964_p0 = scmp.ne.s32.totalorder %s1347_s2, %s963_s11  ;;  %p967_p1 = scmp.lt.u32.totalorder %s963_s11, %s1347_s2 }
   0x9   :  { %p969_p2 = pnand %p967_p1, %p964_p0 }
   0xb   :  { %972 = shalt.err (!%p969_p2)
}
   0xc   :  { %s973_s16 = scalar_lea.vmem %s42_s28, 256  ;;  %p978_p4 = scmp.lt.s32.totalorder %s42_s28, %s42_s28 }
   0xd   :  { %p974_p3 = scmp.ne.s32.totalorder %s42_s28, %s973_s16  ;;  %p979_p5 = scmp.lt.s32.totalorder %s973_s16, %s973_s16 }
   0xf   :  { %p980_p6 = por %p979_p5, %p978_p4 }
  0x11   :  { %p981_p7 = pnand %p980_p6, %p974_p3 }
  0x13   :  { %984 = shalt.err (!%p981_p7)
}
  0x14   :  { %s1153_s17 = smov 64   ;;  %s1154_s18 = smov 4  }
  0x15   :  { %47 = dma.hbm_to_vmem [thread:$0]  %s1347_s2, 256, %s42_s28, [#allocation8], %s1153_s17, %s1153_s17, %s1154_s18  }
  0x16   :  { %s985_s23 = scalar_lea.hbm %s1349_s4, 16 }
  0x17   :  { %p986_p8 = scmp.ne.s32.totalorder %s1349_s4, %s985_s23  ;;  %p989_p9 = scmp.lt.u32.totalorder %s985_s23, %s1349_s4 }
  0x19   :  { %p991_p10 = pnand %p989_p9, %p986_p8 }
  0x1b   :  { %994 = shalt.err (!%p991_p10)
}
  0x1c   :  { %s995_s29 = scalar_lea.vmem %s1211_s30, 16  ;;  %s999_s2 = scalar_lea.vmem %s1211_s30, 32 }
  0x1d   :  { %p996_p11 = scmp.ne.s32.totalorder %s1211_s30, %s995_s29  ;;  %p1000_p12 = scmp.lt.s32.totalorder %s1211_s30, %s1211_s30 }
  0x1e   :  { %p1001_p13 = scmp.lt.s32.totalorder %s999_s2, %s995_s29 }
  0x20   :  { %p1002_p0 = por %p1001_p13, %p1000_p12 }
  0x22   :  { %p1003_p1 = pnand %p1002_p0, %p996_p11 }
  0x24   :  { %1006 = shalt.err (!%p1003_p1)
}
  0x25   :  { %69 = dma.hbm_to_vmem [thread:$0]  %s1349_s4, 16, %s1211_s30, [#allocation11]  }
  0x26   :  { %s704_s12 = sshll.u32 %s1345_s0, 10  ;;  %s1155_s16 = smov [#allocation4]  }
  0x27   :  { %s28_s15 = scalar_lea.hbm %s1346_s1, %s704_s12  ;;  %s29_s19 = sshll.u32 %s1155_s16, 4  ;;  %s30_s19 = int_to_ptr.vmem [resolvable:$true] %s29_s19 }
  0x28   :  { %s1007_s20 = scalar_lea.hbm %s28_s15, 1024  ;;  %s1009_s23 = scalar_lea.hbm %s1346_s1, 1024 }
  0x29   :  { %p1008_p2 = scmp.ne.s32.totalorder %s28_s15, %s1007_s20  ;;  %p1010_p3 = scmp.lt.u32.totalorder %s28_s15, %s1346_s1 }
  0x2a   :  { %p1011_p4 = scmp.lt.u32.totalorder %s1009_s23, %s1007_s20  ;;  %p1013_p6 = scmp.lt.u32.totalorder %s1007_s20, %s28_s15 }
  0x2c   :  { %p1012_p5 = por %p1011_p4, %p1010_p3 }
  0x2e   :  { %p1014_p7 = por %p1013_p6, %p1012_p5 }
  0x30   :  { %p1015_p8 = pnand %p1014_p7, %p1008_p2 }
  0x32   :  { %1018 = shalt.err (!%p1015_p8)
}
  0x33   :  { %s1019_s0 = scalar_lea.vmem %s30_s19, 1024  ;;  %p1024_p10 = scmp.lt.s32.totalorder %s30_s19, %s30_s19 }
  0x34   :  { %p1020_p9 = scmp.ne.s32.totalorder %s30_s19, %s1019_s0  ;;  %p1025_p11 = scmp.lt.s32.totalorder %s1019_s0, %s1019_s0 }
  0x36   :  { %p1026_p12 = por %p1025_p11, %p1024_p10 }
  0x38   :  { %p1027_p13 = pnand %p1026_p12, %p1020_p9 }
  0x3a   :  { %1030 = shalt.err (!%p1027_p13)
}
  0x3b   :  { %35 = dma.hbm_to_vmem [thread:$0]  %s28_s15, 1024, %s30_s19, [#allocation5], %s1153_s17, %s1153_s17, %s1154_s18  }
  0x3c   :  { %s1156_s4 = smov [#allocation9]   ;;  %s1157_s1 = smov [#allocation12]  }
  0x3d   :  { %s53_s30 = sshll.u32 %s1156_s4, 4  ;;  %s75_s26 = sshll.u32 %s1157_s1, 4  ;;  %s54_s30 = int_to_ptr.vmem [resolvable:$true] %s53_s30  ;;  %s76_s26 = int_to_ptr.vmem [resolvable:$true] %s75_s26 }
  0x3e   :  { %s1031_s2 = scalar_lea.hbm %s1348_s3, 1024 }
  0x3f   :  { %p1032_p0 = scmp.ne.s32.totalorder %s1348_s3, %s1031_s2  ;;  %p1035_p1 = scmp.lt.u32.totalorder %s1031_s2, %s1348_s3 }
  0x41   :  { %p1037_p2 = pnand %p1035_p1, %p1032_p0 }
  0x43   :  { %1040 = shalt.err (!%p1037_p2)
}
  0x44   :  { %s1041_s12 = scalar_lea.vmem %s54_s30, 1024  ;;  %p1046_p4 = scmp.lt.s32.totalorder %s54_s30, %s54_s30 }
  0x45   :  { %p1042_p3 = scmp.ne.s32.totalorder %s54_s30, %s1041_s12  ;;  %p1047_p5 = scmp.lt.s32.totalorder %s1041_s12, %s1041_s12 }
  0x47   :  { %p1048_p6 = por %p1047_p5, %p1046_p4 }
  0x49   :  { %p1049_p7 = pnand %p1048_p6, %p1042_p3 }
  0x4b   :  { %1052 = shalt.err (!%p1049_p7)
}
  0x4c   :  { %59 = dma.hbm_to_vmem [thread:$0]  %s1348_s3, 1024, %s54_s30, [#allocation8], %s1153_s17, %s1153_s17, %s1154_s18  }
  0x4d   :  { %s1053_s19 = scalar_lea.hbm %s1350_s5, 1024 }
  0x4e   :  { %p1054_p8 = scmp.ne.s32.totalorder %s1350_s5, %s1053_s19  ;;  %p1057_p9 = scmp.lt.u32.totalorder %s1053_s19, %s1350_s5 }
  0x50   :  { %p1059_p10 = pnand %p1057_p9, %p1054_p8 }
  0x52   :  { %1062 = shalt.err (!%p1059_p10)
}
  0x53   :  { %s1063_s24 = scalar_lea.vmem %s76_s26, 1024  ;;  %p1068_p12 = scmp.lt.s32.totalorder %s76_s26, %s76_s26 }
  0x54   :  { %p1064_p11 = scmp.ne.s32.totalorder %s76_s26, %s1063_s24  ;;  %p1069_p13 = scmp.lt.s32.totalorder %s1063_s24, %s1063_s24 }
  0x56   :  { %p1070_p0 = por %p1069_p13, %p1068_p12 }
  0x58   :  { %p1071_p1 = pnand %p1070_p0, %p1064_p11 }
  0x5a   :  { %1074 = shalt.err (!%p1071_p1)
}
  0x5b   :  { %81 = dma.hbm_to_vmem [thread:$0]  %s1350_s5, 1024, %s76_s26, [#allocation11], %s1153_s17, %s1153_s17, %s1154_s18  }
  0x5c   :  { %1141 = dma.done.wait [#allocation5], 1024  }
  0x5d   :  { %1142 = vsyncadd [#allocation5], 4294966272 }
  0x5e   :  { %1143 = dma.done.wait [#allocation8], 1280  }
  0x5f   :  { %1144 = vsyncadd [#allocation8], 4294966016 }
  0x60   :  { %1145 = dma.done.wait [#allocation11], 1040  }
  0x61   :  { %1146 = vsyncadd [#allocation11], 4294966256  ;;  %v937_v0 = vld [vmem:[#allocation9] sm:$0xff]   ;;  %v938_v1 = vld [vmem:[#allocation9 + $0x8] sm:$0xff]   ;;  %v1158_v16 = vmov 0.0|0.0   ;;  %vm1159_vm0 = vmmov 0  }
  0x62   :  { %811 = vmatprep.subr.bf16.mxu0 %v937_v0  ;;  %v939_v2 = vld [vmem:[#allocation9 + $0x10] sm:$0xff]   ;;  %v940_v3 = vld [vmem:[#allocation9 + $0x18] sm:$0xff]   ;;  %v941_v5 = vld [vmem:[#allocation9 + $0x20] sm:$0xff]   ;;  %898 = vmatprep.subr.bf16.mxu1 %v1158_v16  ;;  %v1160_v27 = vmov 0.0   ;;  %vm605_vm1 = vcmask 7168   ;;  %s1161_s5 = smov [#allocation13]  }
  0x63   :  { %812 = vmatpush3.bf16.msra.mxu0 %v937_v0  ;;  %v945_v4 = vld [vmem:[#allocation4] sm:$0xff]   ;;  %v942_v6 = vld [vmem:[#allocation9 + $0x28] sm:$0xff]   ;;  %v944_v8 = vld [vmem:[#allocation9 + $0x38] sm:$0xff]   ;;  %875 = vmatprep.mubr.msk.f32.mxu1 %vm1159_vm0, %v1160_v27  ;;  %s615_s0 = sshll.u32 %s1161_s5, 4  ;;  %s616_s0 = int_to_ptr.vmem [resolvable:$true] %s615_s0 }
  0x64   :  { %813 = vmatprep.subr.bf16.mxu0 %v938_v1  ;;  %827 = vmatprep.mubr.bf16.mxu0 %v945_v4  ;;  %v943_v7 = vld [vmem:[#allocation9 + $0x30] sm:$0xff]   ;;  %v946_v9 = vld [vmem:[#allocation4 + $0x8] sm:$0xff]   ;;  %v947_v10 = vld [vmem:[#allocation4 + $0x10] sm:$0xff]   ;;  %s1075_s4 = scalar_lea.vmem %s616_s0, 1024  ;;  %p1080_p3 = scmp.lt.s32.totalorder %s616_s0, %s616_s0 }
  0x65   :  { %v948_v11 = vld [vmem:[#allocation4 + $0x18] sm:$0xff]   ;;  %v949_v12 = vld [vmem:[#allocation4 + $0x20] sm:$0xff]   ;;  %v950_v13 = vld [vmem:[#allocation4 + $0x28] sm:$0xff]   ;;  %p1076_p2 = scmp.ne.s32.totalorder %s616_s0, %s1075_s4  ;;  %p1081_p4 = scmp.lt.s32.totalorder %s1075_s4, %s1075_s4 }
  0x66   :  { %v951_v14 = vld [vmem:[#allocation4 + $0x30] sm:$0xff]   ;;  %v952_v15 = vld [vmem:[#allocation4 + $0x38] sm:$0xff]   ;;  %v955_v19 = vld [vmem:[#allocation12 + $0x10] sm:$0xff]  }
  0x67   :  { %814 = vmatpush3.bf16.msra.mxu0 %v938_v1  ;;  %v953_v17 = vld [vmem:[#allocation12] sm:$0xff]   ;;  %v954_v18 = vld [vmem:[#allocation12 + $0x8] sm:$0xff]   ;;  %v956_v20 = vld [vmem:[#allocation12 + $0x18] sm:$0xff]   ;;  %p1082_p5 = por %p1081_p4, %p1080_p3 }
  0x68   :  { %815 = vmatprep.subr.bf16.mxu0 %v939_v2  ;;  %v957_v21 = vld [vmem:[#allocation12 + $0x20] sm:$0xff]   ;;  %v958_v22 = vld [vmem:[#allocation12 + $0x28] sm:$0xff]   ;;  %v959_v23 = vld [vmem:[#allocation12 + $0x30] sm:$0xff]  }
  0x69   :  { %v960_v24 = vld [vmem:[#allocation12 + $0x38] sm:$0xff]   ;;  %v961_v25 = vld [vmem:[#allocation7] sm:$0xff]   ;;  %p1083_p6 = pnand %p1082_p5, %p1076_p2 }
  0x6a   :  { %v962_v26 = vld [vmem:[#allocation7 + $0x8] sm:$0xff]   ;;  %v404_v52 = vld [vmem:[#allocation10] sm:$0x1] }
  0x6b   :  { %816 = vmatpush3.bf16.msra.mxu0 %v939_v2 }
  0x6c   :  { %817 = vmatprep.subr.bf16.mxu0 %v940_v3 }
  0x6f   :  { %818 = vmatpush3.bf16.msra.mxu0 %v940_v3 }
  0x70   :  { %819 = vmatprep.subr.bf16.mxu0 %v941_v5 }
  0x73   :  { %820 = vmatpush3.bf16.msra.mxu0 %v941_v5 }
  0x74   :  { %821 = vmatprep.subr.bf16.mxu0 %v942_v6 }
  0x77   :  { %822 = vmatpush3.bf16.msra.mxu0 %v942_v6 }
  0x78   :  { %823 = vmatprep.subr.bf16.mxu0 %v943_v7 }
  0x7b   :  { %824 = vmatpush3.bf16.msra.mxu0 %v943_v7 }
  0x7c   :  { %825 = vmatprep.subr.bf16.mxu0 %v944_v8 }
  0x7f   :  { %826 = vmatpush3.bf16.msra.mxu0 %v944_v8 }
  0x80   :  { %878 = vmatprep.subr.bf16.mxu0 %v953_v17 }
  0x82   :  { %828 = vmatmul.mubr.bf16.vlgmr.msra.gmra.mrb[0].mxu0 %v946_v9 }
  0x83   :  { %831 = vmatprep.mubr.bf16.mxu0 %v947_v10  ;;  %879 = vmatpush3.bf16.msra.mxu0 %v953_v17 }
  0x84   :  { %880 = vmatprep.subr.bf16.mxu0 %v954_v18 }
  0x87   :  { %881 = vmatpush3.bf16.msra.mxu0 %v954_v18 }
  0x88   :  { %882 = vmatprep.subr.bf16.mxu0 %v955_v19 }
  0x8a   :  { %832 = vmatmul.mubr.bf16.gmra.mrb[4].mxu0 %v948_v11 }
  0x8b   :  { %835 = vmatprep.mubr.bf16.mxu0 %v949_v12  ;;  %883 = vmatpush3.bf16.msra.mxu0 %v955_v19 }
  0x8c   :  { %884 = vmatprep.subr.bf16.mxu0 %v956_v20 }
  0x8f   :  { %885 = vmatpush3.bf16.msra.mxu0 %v956_v20 }
  0x90   :  { %886 = vmatprep.subr.bf16.mxu0 %v957_v21 }
  0x92   :  { %836 = vmatmul.mubr.bf16.gmra.mrb[8].mxu0 %v950_v13 }
  0x93   :  { %839 = vmatprep.mubr.bf16.mxu0 %v951_v14  ;;  %887 = vmatpush3.bf16.msra.mxu0 %v957_v21 }
  0x94   :  { %888 = vmatprep.subr.bf16.mxu0 %v958_v22 }
  0x97   :  { %889 = vmatpush3.bf16.msra.mxu0 %v958_v22 }
  0x98   :  { %890 = vmatprep.subr.bf16.mxu0 %v959_v23 }
  0x9a   :  { %840 = vmatmul.mubr.bf16.gmra.mrb[12].mxu0 %v952_v15 }
  0x9b   :  { %891 = vmatpush3.bf16.msra.mxu0 %v959_v23  ;;  %894 = vmatprep.mubr.bf16.mxu0 %v961_v25 }
  0x9c   :  { %892 = vmatprep.subr.bf16.mxu0 %v960_v24 }
  0x9f   :  { %893 = vmatpush3.bf16.msra.mxu0 %v960_v24 }
  0xa2   :  { %895 = vmatmul.mubr.bf16.vlgmr.msra.gmra.mrb[16].mxu0 %v962_v26 }
 0x155   :  { %v829_v28 = vpop.f32.mrb[0].mxu0 }
 0x156   :  { %v261_v29 = vpop.f32.mrb[1].mxu0 }
 0x157   :  { %v830_v30 = vpop.f32.mrb[2].mxu0 }
 0x158   :  { %v729_v31 = vpack.c.bf16 %v830_v30, %v829_v28  ;;  %v264_v32 = vpop.f32.mrb[3].mxu0 }
 0x159   :  { %v724_v33 = vpack.c.bf16 %v264_v32, %v261_v29 }
 0x15a   :  { %761 = vst [vmem:[#allocation13 + $0x8] sm:$0xff] %v729_v31  }
 0x15b   :  { %725 = vst [vmem:[#allocation13] sm:$0xff] %v724_v33   ;;  %900 = vmatpush3.bf16.xpose.msra.mxu1 %v724_v33 }
 0x15c   :  { %901 = vmatprep.subr.bf16.mxu1 %v1158_v16 }
 0x15d   :  { %v833_v34 = vpop.f32.mrb[4].mxu0 }
 0x15e   :  { %v277_v35 = vpop.f32.mrb[5].mxu0 }
 0x15f   :  { %v834_v36 = vpop.f32.mrb[6].mxu0 }
 0x160   :  { %v739_v37 = vpack.c.bf16 %v834_v36, %v833_v34  ;;  %v280_v38 = vpop.f32.mrb[7].mxu0 }
 0x161   :  { %v734_v39 = vpack.c.bf16 %v280_v38, %v277_v35 }
 0x162   :  { %763 = vst [vmem:[#allocation13 + $0x18] sm:$0xff] %v739_v37  }
 0x163   :  { %903 = vmatpush3.bf16.xpose.msra.mxu1 %v729_v31  ;;  %762 = vst [vmem:[#allocation13 + $0x10] sm:$0xff] %v734_v39  }
 0x164   :  { %904 = vmatprep.subr.bf16.mxu1 %v1158_v16 }
 0x165   :  { %v837_v40 = vpop.f32.mrb[8].mxu0 }
 0x166   :  { %v293_v41 = vpop.f32.mrb[9].mxu0 }
 0x167   :  { %v838_v42 = vpop.f32.mrb[10].mxu0 }
 0x168   :  { %v749_v43 = vpack.c.bf16 %v838_v42, %v837_v40  ;;  %v296_v44 = vpop.f32.mrb[11].mxu0 }
 0x169   :  { %v744_v45 = vpack.c.bf16 %v296_v44, %v293_v41 }
 0x16a   :  { %765 = vst [vmem:[#allocation13 + $0x28] sm:$0xff] %v749_v43  }
 0x16b   :  { %906 = vmatpush3.bf16.xpose.msra.mxu1 %v734_v39  ;;  %764 = vst [vmem:[#allocation13 + $0x20] sm:$0xff] %v744_v45  }
 0x16c   :  { %907 = vmatprep.subr.bf16.mxu1 %v1158_v16 }
 0x16d   :  { %v841_v46 = vpop.f32.mrb[12].mxu0 }
 0x16e   :  { %v309_v47 = vpop.f32.mrb[13].mxu0 }
 0x16f   :  { %v842_v48 = vpop.f32.mrb[14].mxu0 }
 0x170   :  { %v759_v49 = vpack.c.bf16 %v842_v48, %v841_v46  ;;  %v312_v50 = vpop.f32.mrb[15].mxu0 }
 0x171   :  { %v754_v51 = vpack.c.bf16 %v312_v50, %v309_v47 }
 0x172   :  { %767 = vst [vmem:[#allocation13 + $0x38] sm:$0xff] %v759_v49  }
 0x173   :  { %909 = vmatpush3.bf16.xpose.msra.mxu1 %v739_v37  ;;  %766 = vst [vmem:[#allocation13 + $0x30] sm:$0xff] %v754_v51  }
 0x174   :  { %910 = vmatprep.subr.bf16.mxu1 %v1158_v16 }
 0x175   :  { %v896_v53 = vpop.f32.mrb[16].mxu0 }
 0x176   :  { %608 = vst.msk [vmem:[#allocation16 + $0x10] sm:$0xff] %vm605_vm1, %v896_v53  ;;  %v590_v54 = vpop.f32.mrb[17].mxu0 }
 0x177   :  { %606 = vst.msk [vmem:[#allocation16] sm:$0xff] %vm605_vm1, %v590_v54  ;;  %v897_v55 = vpop.f32.mrb[18].mxu0 }
 0x178   :  { %609 = vst.msk [vmem:[#allocation16 + $0x18] sm:$0xff] %vm605_vm1, %v897_v55  ;;  %v593_v56 = vpop.f32.mrb[19].mxu0 }
 0x179   :  { %607 = vst.msk [vmem:[#allocation16 + $0x8] sm:$0xff] %vm605_vm1, %v593_v56 }
 0x17b   :  { %912 = vmatpush3.bf16.xpose.msra.mxu1 %v744_v45 }
 0x17c   :  { %913 = vmatprep.subr.bf16.mxu1 %v1158_v16 }
 0x183   :  { %915 = vmatpush3.bf16.xpose.msra.mxu1 %v749_v43 }
 0x184   :  { %916 = vmatprep.subr.bf16.mxu1 %v1158_v16 }
 0x18b   :  { %918 = vmatpush3.bf16.xpose.msra.mxu1 %v754_v51 }
 0x18c   :  { %919 = vmatprep.subr.bf16.mxu1 %v1158_v16 }
 0x193   :  { %921 = vmatpush3.bf16.xpose.msra.mxu1 %v759_v49 }
 0x19a   :  { %876 = vmatmul.mubr.f32.vlgmr.msra.gmra.mrb[0].mxu1 %v404_v52 }
 0x19b   :  { %1086 = shalt.err (!%p1083_p6)
}
 0x19c   :  { %s1087_s26 = scalar_lea.hbm %s1351_s6, 1024 }
 0x19d   :  { %p1088_p7 = scmp.ne.s32.totalorder %s1351_s6, %s1087_s26  ;;  %p1091_p8 = scmp.lt.u32.totalorder %s1087_s26, %s1351_s6 }
 0x19f   :  { %p1093_p9 = pnand %p1091_p8, %p1088_p7 }
 0x1a1   :  { %1096 = shalt.err (!%p1093_p9)
}
 0x1a2   :  { %621 = dma.vmem_to_hbm [thread:$0]  %s616_s0, 1024, %s1351_s6, [#allocation6], %s1153_s17, %s1153_s17, %s1154_s18  }
 0x1a3   :  { %s1162_s11 = smov [#allocation14]   ;;  %s1163_s13 = smov [#allocation16]  }
 0x1a4   :  { %s628_s12 = sshll.u32 %s1162_s11, 4  ;;  %s637_s14 = sshll.u32 %s1163_s13, 4  ;;  %s629_s12 = int_to_ptr.vmem [resolvable:$true] %s628_s12  ;;  %s1314_s14 = int_to_ptr.vmem [resolvable:$true] %s637_s14 }
 0x1a5   :  { %s1097_s15 = scalar_lea.vmem %s629_s12, 16  ;;  %s1101_s16 = scalar_lea.vmem %s629_s12, 32 }
 0x1a6   :  { %p1098_p10 = scmp.ne.s32.totalorder %s629_s12, %s1097_s15  ;;  %p1102_p11 = scmp.lt.s32.totalorder %s629_s12, %s629_s12 }
 0x1a7   :  { %p1103_p12 = scmp.lt.s32.totalorder %s1101_s16, %s1097_s15 }
 0x1a9   :  { %p1104_p13 = por %p1103_p12, %p1102_p11 }
 0x1ab   :  { %p1105_p0 = pnand %p1104_p13, %p1098_p10 }
 0x26d   :  { %v471_v57 = vpop.f32.mrb[0].mxu1 }
 0x26e   :  { %475 = vst [vmem:[#allocation14] sm:$0x1] %v471_v57  ;;  %v877_v58 = vpop.f32.mrb[1].mxu1 }
 0x26f   :  { %1108 = shalt.err (!%p1105_p0)
}
 0x270   :  { %s1109_s17 = scalar_lea.hbm %s1352_s7, 16 }
 0x271   :  { %p1110_p1 = scmp.ne.s32.totalorder %s1352_s7, %s1109_s17  ;;  %p1113_p2 = scmp.lt.u32.totalorder %s1109_s17, %s1352_s7 }
 0x273   :  { %p1115_p3 = pnand %p1113_p2, %p1110_p1 }
 0x275   :  { %1118 = shalt.err (!%p1115_p3)
}
 0x276   :  { %631 = dma.vmem_to_hbm [thread:$0]  %s629_s12, 16, %s1352_s7, [#allocation15]  }
 0x277   :  { %s1119_s3 = scalar_lea.vmem %s1314_s14, 512  ;;  %p1124_p5 = scmp.lt.s32.totalorder %s1314_s14, %s1314_s14 }
 0x278   :  { %p1120_p4 = scmp.ne.s32.totalorder %s1314_s14, %s1119_s3  ;;  %p1125_p6 = scmp.lt.s32.totalorder %s1119_s3, %s1119_s3 }
 0x27a   :  { %p1126_p7 = por %p1125_p6, %p1124_p5 }
 0x27c   :  { %p1127_p8 = pnand %p1126_p7, %p1120_p4 }
 0x27e   :  { %1130 = shalt.err (!%p1127_p8)
}
 0x27f   :  { %s1131_s0 = scalar_lea.hbm %s1353_s8, 512 }
 0x280   :  { %p1132_p9 = scmp.ne.s32.totalorder %s1353_s8, %s1131_s0  ;;  %p1135_p10 = scmp.lt.u32.totalorder %s1131_s0, %s1353_s8 }
 0x282   :  { %p1137_p11 = pnand %p1135_p10, %p1132_p9 }
 0x284   :  { %1140 = shalt.err (!%p1137_p11)
}
 0x285   :  { %s1164_s7 = smov 128   ;;  %s1165_s27 = smov 8  }
 0x286   :  { %643 = dma.vmem_to_hbm [thread:$0]  %s1314_s14, 512, %s1353_s8, [#allocation15], %s1164_s7, %s1164_s7, %s1165_s27  }
 0x287   :  { %1147 = dma.done.wait [#allocation6], 1024  }
 0x288   :  { %1148 = vsyncadd [#allocation6], 4294966272 }
 0x289   :  { %1149 = dma.done.wait [#allocation15], 528  }
 0x28a   :  { %1150 = vsyncadd [#allocation15], 4294966768 }
 0x28b   :  { %653 = vsyncpa [#allocation5], 1 }
 0x28c   :  { %654 = vsyncpa [#allocation8], 1 }
 0x28d   :  { %655 = vsyncpa [#allocation11], 1 }
 0x28e   :  { %656 = vsyncpa [#allocation6], 1 }
 0x28f   :  { %657 = vsyncpa [#allocation15], 1 }

</bundles_post_ra>
